<compile_context>
chip_gen: v6e
topology: v6e:2x2x1
jax: 0.10.0
libtpu: 0.0.40
codegen_flags: <defaults>
</compile_context>

<pallas_src>
import jax
import jax.numpy as jnp
from jax.experimental import pallas as pl
from jax.experimental.pallas import tpu as pltpu

# Tiled-copy fallback budgets: 4 MiB/buffer * (2 in + 2 out double buffers)
# = 16 MiB peak -> fits v5e's 16 MiB scoped default, v6e/v7x 32 MiB scoped,
# and stays well under v7x's 64 MiB physical VMEM.  The explicit limit below
# is safe on every generation (v5e/v6e: 128 MiB physical, v7x: 64 MiB).
_TILE_BYTES = 4 * 1024 * 1024
_VMEM_LIMIT_BYTES = 48 * 1024 * 1024


def flatten_free(x: jax.Array) -> jax.Array:
    """Production path: flatten is a free, metadata-only reshape in XLA."""
    return x.reshape(x.shape[0], -1)


# ---------------------------------------------------------------------------
# Primary Pallas path: one HBM->HBM DMA (leanest legal kernel for a copy).
# ---------------------------------------------------------------------------
def _dma_copy_kernel(x_hbm, o_hbm, sem):
    cp = pltpu.make_async_copy(x_hbm, o_hbm, sem)
    cp.start()
    cp.wait()


def flatten(x: jax.Array) -> jax.Array:
    """Pallas equivalent of torch Flatten: (N, ...) -> (N, prod(rest)).

    Reshape happens in the wrapper (free); the kernel is a single HBM->HBM
    DMA, avoiding HBM->VMEM->vreg->VMEM->HBM staging entirely.
    """
    n = x.shape[0]
    feat = 1
    for d in x.shape[1:]:
        feat *= d
    x2d = x.reshape(n, feat)  # metadata-only
    itemsize = jnp.dtype(x.dtype).itemsize

    return pl.pallas_call(
        _dma_copy_kernel,
        out_shape=jax.ShapeDtypeStruct((n, feat), x.dtype),
        in_specs=[pl.BlockSpec(memory_space=pl.ANY)],
        out_specs=pl.BlockSpec(memory_space=pl.ANY),
        scratch_shapes=[pltpu.SemaphoreType.DMA(())],
        cost_estimate=pl.CostEstimate(
            flops=0, transcendentals=0, bytes_accessed=2 * n * feat * itemsize
        ),
    )(x2d)


# ---------------------------------------------------------------------------
# Alternative: tiled, auto-pipelined VMEM copy (improved per review).
# ---------------------------------------------------------------------------
def _tile_copy_kernel(x_ref, o_ref):
    # Pure vld/vst tile copy; input is presented lane-dense (N, feat).
    o_ref[...] = x_ref[...]


def _sublane_multiple(itemsize: int) -> int:
    # Sub-32-bit dtypes pack along sublanes: one bf16 vreg is [16,128],
    # int8/fp8 [32,128].  Align row blocks to the packed sublane count.
    return max(8, 32 // itemsize)


def _pick_block_feat(feat: int, itemsize: int, rows_mult: int) -> int:
    """Lane-dim block: prefer the full row (contiguous DMA, widest unmasked vst)."""
    if feat <= 128:
        return feat  # full dim is always a legal block shape
    if rows_mult * feat * itemsize <= _TILE_BYTES:
        return feat  # one minimal sublane stripe fits the budget -> full rows
    # Otherwise split feat into 128-multiples within budget, preferring a
    # divisor of feat so no masked remainder blocks are generated.
    max_bf = max(128, ((_TILE_BYTES // (rows_mult * itemsize)) // 128) * 128)
    for cand in range(max_bf, 127, -128):
        if feat % cand == 0:
            return cand
    return max_bf


def _pick_block_rows(n: int, bf: int, itemsize: int, rows_mult: int) -> int:
    """Sublane-dim block: dtype-aware multiple (or full dim), within budget."""
    if n <= rows_mult:
        return n  # full dim is always a legal block shape
    budget_rows = max(rows_mult, _TILE_BYTES // max(1, bf * itemsize))
    bn = min(n, budget_rows)
    bn = max(rows_mult, (bn // rows_mult) * rows_mult)
    # Prefer a bn that divides n (avoids masked remainder blocks); bounded search.
    cand = bn
    for _ in range(64):
        if cand < rows_mult:
            break
        if n % cand == 0:
            return cand
        cand -= rows_mult
    return bn


def flatten_tiled(x: jax.Array) -> jax.Array:
    """Tiled, auto-pipelined lane-dense copy of the flattened view."""
    n = x.shape[0]
    feat = 1
    for d in x.shape[1:]:
        feat *= d
    x2d = x.reshape(n, feat)  # metadata-only

    itemsize = jnp.dtype(x.dtype).itemsize
    rows_mult = _sublane_multiple(itemsize)
    bf = _pick_block_feat(feat, itemsize, rows_mult)
    bn = _pick_block_rows(n, bf, itemsize, rows_mult)

    # v7x megacore: if everything fits in one block, force a 2-way feat split
    # (rounded to a 128 multiple) so both TensorCores get work.
    if pl.cdiv(n, bn) == 1 and pl.cdiv(feat, bf) == 1 and feat >= 256:
        bf = ((pl.cdiv(feat, 2) + 127) // 128) * 128

    grid = (pl.cdiv(n, bn), pl.cdiv(feat, bf))

    return pl.pallas_call(
        _tile_copy_kernel,
        out_shape=jax.ShapeDtypeStruct((n, feat), x.dtype),
        grid=grid,
        in_specs=[pl.BlockSpec((bn, bf), lambda i, j: (i, j))],
        out_specs=pl.BlockSpec((bn, bf), lambda i, j: (i, j)),
        compiler_params=pltpu.CompilerParams(
            dimension_semantics=("parallel", "parallel"),
            vmem_limit_bytes=_VMEM_LIMIT_BYTES,
        ),
        cost_estimate=pl.CostEstimate(
            flops=0, transcendentals=0, bytes_accessed=2 * n * feat * itemsize
        ),
    )(x2d)


if __name__ == "__main__":
    key = jax.random.PRNGKey(0)
    k1, k2, k3 = jax.random.split(key, 3)

    # NCHW feature map: batch=2, C=4, H=W=16  -> (2, 1024).  Primary DMA path.
    x = jax.random.normal(k1, (2, 4, 16, 16), dtype=jnp.float32)
    out = jax.block_until_ready(flatten(x))
    ref = x.reshape(x.shape[0], -1)
    assert out.shape == (2, 4 * 16 * 16), out.shape
    assert out.dtype == x.dtype
    assert bool(jnp.array_equal(out, ref)), "DMA path mismatch vs reference reshape"

    # Larger feat: tiled path with full-row blocks + forced 2-way megacore split.
    y = jax.random.normal(k2, (4, 8, 16, 32), dtype=jnp.float32)  # feat = 4096
    out2 = jax.block_until_ready(flatten_tiled(y))
    ref2 = y.reshape(y.shape[0], -1)
    assert out2.shape == (4, 8 * 16 * 32), out2.shape
    assert bool(jnp.array_equal(out2, ref2)), "tiled path mismatch vs reference"

    # bf16: exercises the dtype-aware sublane multiple and full-dim edge blocks.
    z = jax.random.normal(k3, (2, 3, 5, 7), dtype=jnp.bfloat16)  # feat = 105
    out3 = jax.block_until_ready(flatten_tiled(z))
    ref3 = z.reshape(z.shape[0], -1)
    assert out3.shape == (2, 3 * 5 * 7), out3.shape
    assert bool(jnp.array_equal(out3, ref3)), "bf16 tiled path mismatch vs reference"

    print("KERNEL_OK")
</pallas_src>

<mosaic_0001>
module attributes {stable_mosaic.version = 11 : i64} {
  func.func @_dma_copy_kernel(%arg0: memref<2x1024xf32, #tpu.memory_space<any>>, %arg1: memref<2x1024xf32, #tpu.memory_space<any>>, %arg2: memref<!tpu.dma_semaphore, #tpu.memory_space<semaphore_mem>>) attributes {dimension_semantics = [], scalar_prefetch = 0 : i64, scratch_operands = 1 : i64, tpu.core_type = #tpu.core_type<tc>} {
    tpu.enqueue_dma source(%arg0 : memref<2x1024xf32, #tpu.memory_space<any>>) target(%arg1 : memref<2x1024xf32, #tpu.memory_space<any>>) target_semaphore(%arg2 : memref<!tpu.dma_semaphore, #tpu.memory_space<semaphore_mem>>)
    tpu.wait_dma2 semaphore(%arg2 : memref<!tpu.dma_semaphore, #tpu.memory_space<semaphore_mem>>) src(%arg0 : memref<2x1024xf32, #tpu.memory_space<any>>) dst(%arg1 : memref<2x1024xf32, #tpu.memory_space<any>>)
    return
  }
}

</mosaic_0001>

<bundles_post_ra>
// kernel: tpu_custom_call.1
= control target key start
LH: loop header
LB: loop body
LE: loop exit
PB: predicated region body
PF: predicated region fallthrough
CT: control target
= control target key end

     0   :  { %s29_s6 = smov [#allocation2]   ;;  %s30_s7 = smov 131072   ;;  %s48_s0 = inlined_call_operand.hbm [shape: f32[2,1024], index: 0, kind: input, shape index: {}]   ;;  %s49_s1 = inlined_call_operand.hbm [shape: f32[2,1024], index: 1, kind: output, shape index: {}]  }
   0x1   :  { %s31_s8 = smov 0  }
   0x2   :  { %12 = dma.general %s48_s0, 256, %s49_s1, %s29_s6, %s30_s7, [#allocation4], %s31_s8, 0  }
   0x3   :  { %27 = dma.done.wait [#allocation2], 256 }
   0x4   :  { %28 = vsyncadd [#allocation2], 4294967040 }
   0x5   :  { %17 = vsyncmov [#allocation2] }
   0x8   :  { %s18_s13 = vpop.sfrf %17 }
   0x9   :  { %p23_p0 = scmp.ne.s32.totalorder %s18_s13, 0 }
   0xb   :  { %22 = shalt.err (%p23_p0)  }

</bundles_post_ra>
